<compile_context>
chip_gen: v5e
topology: v5e:2x2
jax: 0.10.0
libtpu: 0.0.40
codegen_flags: <defaults>
</compile_context>

<pallas_src>
from functools import partial

import jax
import jax.numpy as jnp
from jax import lax
from jax.experimental import pallas as pl
from jax.experimental.pallas import tpu as pltpu

EPS = 1e-5  # nn.LayerNorm default eps


def _layernorm(x, w, b):
    mean = jnp.mean(x, axis=-1, keepdims=True)
    var = jnp.mean((x - mean) ** 2, axis=-1, keepdims=True)   # biased var (PyTorch LN)
    return (x - mean) * lax.rsqrt(var + EPS) * w + b


def _gelu_tanh(x):
    # TODO(synk): PyTorch nn.GELU() defaults to the exact erf form; the tanh approximation
    # is used here for guaranteed Mosaic lowering (~1e-3 max abs error).
    c = 0.7978845608028654  # sqrt(2/pi)
    return 0.5 * x * (1.0 + jnp.tanh(c * (x + 0.044715 * x * x * x)))


def transformer_block_kernel(num_heads, kv_tile,
                             x_ref, ln1_w, ln1_b, wqkv_t, bqkv, wo_t, bo,
                             ln2_w, ln2_b, w1_t, b1, w2_t, b2,
                             o_ref, heads_ref):
    S, D = x_ref.shape
    hd = D // num_heads
    bf16 = jnp.bfloat16

    # Single load of (pre-transposed, bf16) weights and (f32) vector params — once per step.
    wqkv = wqkv_t[...]            # (D, 3D) bf16, Q columns pre-scaled by 1/sqrt(hd)
    wo = wo_t[...]                # (D, D)  bf16
    w1 = w1_t[...]                # (D, Dh) bf16
    w2 = w2_t[...]                # (Dh, D) bf16
    b_qkv = bqkv[0]               # (3D,) f32, Q part pre-scaled
    b_o = bo[0]
    b_1 = b1[0]
    b_2 = b2[0]
    g1, be1 = ln1_w[0], ln1_b[0]
    g2, be2 = ln2_w[0], ln2_b[0]

    x = x_ref[...]                                            # (S, D) f32

    # ---------------- attention branch ----------------
    y = _layernorm(x, g1, be1)                                # f32
    # bf16 immediately: every downstream consumer is an MXU input.
    qkv = (jnp.dot(y.astype(bf16), wqkv, preferred_element_type=jnp.float32)
           + b_qkv).astype(bf16)                              # (S, 3D) bf16

    for h in range(num_heads):                                # static, small
        lo = h * hd
        qh = qkv[:, lo:lo + hd]                               # (S, hd) bf16

        # KV-tiled online softmax: at most (S, kv_tile) f32 scores live at a time.
        m = l = acc = None
        for t0 in range(0, S, kv_tile):                       # static KV-tile loop
            t1 = min(t0 + kv_tile, S)
            kh = qkv[t0:t1, D + lo:D + lo + hd]               # (T, hd) bf16
            vh = qkv[t0:t1, 2 * D + lo:2 * D + lo + hd]       # (T, hd) bf16
            # contract on the last dim of BOTH operands: no XLU transpose of K
            s = lax.dot_general(qh, kh, (((1,), (1,)), ((), ())),
                                preferred_element_type=jnp.float32)   # (S, T) f32
            tile_max = jnp.max(s, axis=-1, keepdims=True)
            if m is None:                                     # first tile: direct init
                m = tile_max
                p = jnp.exp(s - m)                            # f32, EUP
                l = jnp.sum(p, axis=-1, keepdims=True)
                acc = jnp.dot(p.astype(bf16), vh,
                              preferred_element_type=jnp.float32)     # (S, hd) f32
            else:                                             # running max/sum update
                m_new = jnp.maximum(m, tile_max)
                alpha = jnp.exp(m - m_new)
                p = jnp.exp(s - m_new)
                l = alpha * l + jnp.sum(p, axis=-1, keepdims=True)
                acc = alpha * acc + jnp.dot(p.astype(bf16), vh,
                                            preferred_element_type=jnp.float32)
                m = m_new

        # Normalize on (S, hd) — not (S, S) — with the EUP reciprocal; write the head's
        # output lane-packed into the (S, D) scratch at its static lane offset.
        heads_ref[:, lo:lo + hd] = acc * pl.reciprocal(l, approx=True)

    # One full-depth (S, D) x (D, D) out-projection instead of H shallow K=hd matmuls.
    attn = jnp.dot(heads_ref[...].astype(bf16), wo,
                   preferred_element_type=jnp.float32)        # (S, D) f32
    x = x + attn + b_o                                        # residual 1

    # ---------------- MLP branch ----------------
    y = _layernorm(x, g2, be2)
    h1 = jnp.dot(y.astype(bf16), w1, preferred_element_type=jnp.float32) + b_1   # (S, Dh)
    h1 = _gelu_tanh(h1)                                       # f32 (v5e: no bf16 VPU/EUP)
    h2 = jnp.dot(h1.astype(bf16), w2, preferred_element_type=jnp.float32) + b_2  # (S, D)
    o_ref[...] = (x + h2).astype(o_ref.dtype)                 # residual 2


def _vmem_limit_bytes(S, D, Dh, kv_tile):
    """Generation-aware VMEM budget derived from the actual buffer sum."""
    weights = 2 * (3 * D * D + D * D + 2 * D * Dh)            # bf16, single-buffered
    act_io = 4 * S * D * 4                                    # in + out blocks, double-buffered f32
    live = (S * 3 * D) * 2 + S * kv_tile * 4 + 2 * S * D * 4 + S * Dh * 4
    small = (9 * D + Dh) * 4                                  # biases + LN params (f32)
    est = int(1.5 * (weights + act_io + live + small)) + (8 << 20)   # + Mosaic internal scratch
    try:
        cap = int(getattr(pltpu.get_tpu_info(), "vmem_capacity_bytes", 64 << 20))
    except Exception:
        cap = 64 << 20
    return max(16 << 20, min(est, int(cap * 0.9)))


def transformer_block(x, params, num_heads, kv_tile=None):
    B, S, D = x.shape
    assert D % num_heads == 0
    Dh = params["w1"].shape[0]
    hd = D // num_heads
    bf16 = jnp.bfloat16

    if kv_tile is None:
        kv_tile = min(S, 512)
    kv_tile = max(1, min(kv_tile, S))

    # Host-side: pre-transpose + bf16 cast; fold the 1/sqrt(hd) Q scale into wqkv_t / bqkv.
    scale = 1.0 / float(hd) ** 0.5
    col_scale = jnp.concatenate([jnp.full((D,), scale, jnp.float32),
                                 jnp.ones((2 * D,), jnp.float32)])
    wqkv_t = (params["wqkv"].T * col_scale).astype(bf16)      # (D, 3D)
    bqkv = params["bqkv"] * col_scale                         # (1, 3D) f32
    wo_t = params["wo"].T.astype(bf16)                        # (D, D)
    w1_t = params["w1"].T.astype(bf16)                        # (D, Dh)
    w2_t = params["w2"].T.astype(bf16)                        # (Dh, D)

    def rep(shape):
        # Constant across the grid: single-buffer (no wasted second VMEM copy).
        return pl.BlockSpec(shape, lambda i: tuple(0 for _ in shape),
                            pipeline_mode=pl.Buffered(1))

    in_specs = [
        pl.BlockSpec((pl.Squeezed(), S, D), lambda i: (i, 0, 0)),   # x
        rep((1, D)), rep((1, D)),                                   # ln1 weight / bias
        rep((D, 3 * D)), rep((1, 3 * D)),                           # in_proj (pre-T, scaled) / bias
        rep((D, D)), rep((1, D)),                                   # out_proj (pre-T) / bias
        rep((1, D)), rep((1, D)),                                   # ln2 weight / bias
        rep((D, Dh)), rep((1, Dh)),                                 # mlp fc1 (pre-T) / bias
        rep((Dh, D)), rep((1, D)),                                  # mlp fc2 (pre-T) / bias
    ]

    # Advisory cost estimate for XLA scheduling around the custom call.
    flops = int(2 * B * S * (3 * D * D + D * D + 2 * D * Dh) + 4 * B * S * S * D)
    transcendentals = int(B * num_heads * S * S + B * S * Dh + 2 * B * S)
    bytes_accessed = int(2 * B * S * D * 4
                         + 2 * (3 * D * D + D * D + 2 * D * Dh)
                         + 4 * (9 * D + Dh))
    cost = pl.CostEstimate(flops=flops, transcendentals=transcendentals,
                           bytes_accessed=bytes_accessed)

    # TODO(synk): on v7x, store wqkv/w1/w2 in fp8 (e4m3) as direct MXU inputs to halve
    # weight DMA/VMEM again; on v5e, accept/emit bf16 activations to halve activation DMA.
    # TODO(synk): if production D (or hd) is not a multiple of 128, pad/repack so the
    # output last dim and per-head lane slices are lane-dense (demo D=32 is masked).
    return pl.pallas_call(
        partial(transformer_block_kernel, num_heads, kv_tile),
        out_shape=jax.ShapeDtypeStruct((B, S, D), x.dtype),
        grid=(B,),
        in_specs=in_specs,
        out_specs=pl.BlockSpec((pl.Squeezed(), S, D), lambda i: (i, 0, 0)),
        scratch_shapes=[pltpu.VMEM((S, D), jnp.float32)],     # lane-packed per-head outputs
        compiler_params=pltpu.CompilerParams(
            dimension_semantics=("parallel",),                # batch elems independent
            vmem_limit_bytes=_vmem_limit_bytes(S, D, Dh, kv_tile),
        ),
        cost_estimate=cost,
    )(x,
      params["ln1_w"], params["ln1_b"],
      wqkv_t, bqkv,
      wo_t, params["bo"],
      params["ln2_w"], params["ln2_b"],
      w1_t, params["b1"],
      w2_t, params["b2"])


def reference(x, params, num_heads):
    """Pure-JAX f32 reference matching the PyTorch module (tanh GELU)."""
    def ln(z, w, b):
        m = z.mean(-1, keepdims=True)
        v = ((z - m) ** 2).mean(-1, keepdims=True)
        return (z - m) / jnp.sqrt(v + EPS) * w + b

    B, S, D = x.shape
    hd = D // num_heads
    y = ln(x, params["ln1_w"][0], params["ln1_b"][0])
    qkv = y @ params["wqkv"].T + params["bqkv"][0]
    q, k, v = jnp.split(qkv, 3, axis=-1)
    q = q.reshape(B, S, num_heads, hd).transpose(0, 2, 1, 3) / jnp.sqrt(hd)
    k = k.reshape(B, S, num_heads, hd).transpose(0, 2, 1, 3)
    v = v.reshape(B, S, num_heads, hd).transpose(0, 2, 1, 3)
    a = jax.nn.softmax(q @ k.transpose(0, 1, 3, 2), axis=-1)
    o = (a @ v).transpose(0, 2, 1, 3).reshape(B, S, D)
    o = o @ params["wo"].T + params["bo"][0]
    x = x + o
    y = ln(x, params["ln2_w"][0], params["ln2_b"][0])
    h = _gelu_tanh(y @ params["w1"].T + params["b1"][0])
    return x + h @ params["w2"].T + params["b2"][0]


if __name__ == "__main__":
    B, S, D, H = 2, 8, 32, 4
    mlp_ratio = 4.0
    Dh = int(D * mlp_ratio)

    key = jax.random.PRNGKey(0)
    ks = jax.random.split(key, 9)
    params = {
        "ln1_w": jnp.ones((1, D), jnp.float32),
        "ln1_b": jnp.zeros((1, D), jnp.float32),
        "wqkv": 0.05 * jax.random.normal(ks[0], (3 * D, D), jnp.float32),
        "bqkv": 0.05 * jax.random.normal(ks[1], (1, 3 * D), jnp.float32),
        "wo":   0.05 * jax.random.normal(ks[2], (D, D), jnp.float32),
        "bo":   0.05 * jax.random.normal(ks[3], (1, D), jnp.float32),
        "ln2_w": jnp.ones((1, D), jnp.float32),
        "ln2_b": jnp.zeros((1, D), jnp.float32),
        "w1":   0.05 * jax.random.normal(ks[4], (Dh, D), jnp.float32),
        "b1":   0.05 * jax.random.normal(ks[5], (1, Dh), jnp.float32),
        "w2":   0.05 * jax.random.normal(ks[6], (D, Dh), jnp.float32),
        "b2":   0.05 * jax.random.normal(ks[7], (1, D), jnp.float32),
    }
    x = jax.random.normal(ks[8], (B, S, D), jnp.float32)

    ref = reference(x, params, H)

    # Exercise both the single-KV-tile fast path (kv_tile=None -> one tile at S=8)
    # and the multi-tile online-softmax path (kv_tile=4 -> two tiles).
    for kvt in (None, 4):
        out = jax.block_until_ready(transformer_block(x, params, H, kv_tile=kvt))
        max_err = float(jnp.max(jnp.abs(out - ref)))
        # bf16 MXU inputs + approx reciprocal -> small numeric drift vs f32 reference.
        assert jnp.allclose(out, ref, atol=2e-2, rtol=2e-2), \
            f"kv_tile={kvt} max_err={max_err}"

    print("KERNEL_OK")
</pallas_src>

<mosaic_0001>
module attributes {stable_mosaic.version = 11 : i64} {
  func.func @transformer_block_kernel(%arg0: i32, %arg1: memref<1x8x32xf32, #tpu.memory_space<vmem>>, %arg2: memref<1x32xf32, #tpu.memory_space<vmem>>, %arg3: memref<1x32xf32, #tpu.memory_space<vmem>>, %arg4: memref<32x96xbf16, #tpu.memory_space<vmem>>, %arg5: memref<1x96xf32, #tpu.memory_space<vmem>>, %arg6: memref<32x32xbf16, #tpu.memory_space<vmem>>, %arg7: memref<1x32xf32, #tpu.memory_space<vmem>>, %arg8: memref<1x32xf32, #tpu.memory_space<vmem>>, %arg9: memref<1x32xf32, #tpu.memory_space<vmem>>, %arg10: memref<32x128xbf16, #tpu.memory_space<vmem>>, %arg11: memref<1x128xf32, #tpu.memory_space<vmem>>, %arg12: memref<128x32xbf16, #tpu.memory_space<vmem>>, %arg13: memref<1x32xf32, #tpu.memory_space<vmem>>, %arg14: memref<1x8x32xf32, #tpu.memory_space<vmem>>, %arg15: memref<8x32xf32, #tpu.memory_space<vmem>>) attributes {dimension_semantics = [#tpu.dimension_semantics<parallel>], iteration_bounds = array<i64: 2>, scalar_prefetch = 0 : i64, scratch_operands = 1 : i64, tpu.core_type = #tpu.core_type<tc>, window_params = [{transform_indices = @transform_0, window_bounds = array<i64: 1, 8, 32>}, {pipeline_mode = #tpu.pipeline_mode<synchronous>, transform_indices = @transform_1, window_bounds = array<i64: 1, 32>}, {pipeline_mode = #tpu.pipeline_mode<synchronous>, transform_indices = @transform_2, window_bounds = array<i64: 1, 32>}, {pipeline_mode = #tpu.pipeline_mode<synchronous>, transform_indices = @transform_3, window_bounds = array<i64: 32, 96>}, {pipeline_mode = #tpu.pipeline_mode<synchronous>, transform_indices = @transform_4, window_bounds = array<i64: 1, 96>}, {pipeline_mode = #tpu.pipeline_mode<synchronous>, transform_indices = @transform_5, window_bounds = array<i64: 32, 32>}, {pipeline_mode = #tpu.pipeline_mode<synchronous>, transform_indices = @transform_6, window_bounds = array<i64: 1, 32>}, {pipeline_mode = #tpu.pipeline_mode<synchronous>, transform_indices = @transform_7, window_bounds = array<i64: 1, 32>}, {pipeline_mode = #tpu.pipeline_mode<synchronous>, transform_indices = @transform_8, window_bounds = array<i64: 1, 32>}, {pipeline_mode = #tpu.pipeline_mode<synchronous>, transform_indices = @transform_9, window_bounds = array<i64: 32, 128>}, {pipeline_mode = #tpu.pipeline_mode<synchronous>, transform_indices = @transform_10, window_bounds = array<i64: 1, 128>}, {pipeline_mode = #tpu.pipeline_mode<synchronous>, transform_indices = @transform_11, window_bounds = array<i64: 128, 32>}, {pipeline_mode = #tpu.pipeline_mode<synchronous>, transform_indices = @transform_12, window_bounds = array<i64: 1, 32>}, {transform_indices = @transform_13, window_bounds = array<i64: 1, 8, 32>}]} {
    %c0 = arith.constant 0 : index
    %c0_0 = arith.constant 0 : index
    %0 = vector.load %arg4[%c0, %c0_0] : memref<32x96xbf16, #tpu.memory_space<vmem>>, vector<32x96xbf16>
    %c0_1 = arith.constant 0 : index
    %c0_2 = arith.constant 0 : index
    %1 = vector.load %arg6[%c0_1, %c0_2] : memref<32x32xbf16, #tpu.memory_space<vmem>>, vector<32x32xbf16>
    %c0_3 = arith.constant 0 : index
    %c0_4 = arith.constant 0 : index
    %2 = vector.load %arg10[%c0_3, %c0_4] : memref<32x128xbf16, #tpu.memory_space<vmem>>, vector<32x128xbf16>
    %c0_5 = arith.constant 0 : index
    %c0_6 = arith.constant 0 : index
    %3 = vector.load %arg12[%c0_5, %c0_6] : memref<128x32xbf16, #tpu.memory_space<vmem>>, vector<128x32xbf16>
    %c0_7 = arith.constant 0 : index
    %c0_8 = arith.constant 0 : index
    %4 = vector.load %arg5[%c0_7, %c0_8] : memref<1x96xf32, #tpu.memory_space<vmem>>, vector<1x96xf32>
    %5 = vector.shape_cast %4 : vector<1x96xf32> to vector<96xf32>
    %c0_9 = arith.constant 0 : index
    %c0_10 = arith.constant 0 : index
    %6 = vector.load %arg7[%c0_9, %c0_10] : memref<1x32xf32, #tpu.memory_space<vmem>>, vector<1x32xf32>
    %7 = vector.shape_cast %6 : vector<1x32xf32> to vector<32xf32>
    %c0_11 = arith.constant 0 : index
    %c0_12 = arith.constant 0 : index
    %8 = vector.load %arg11[%c0_11, %c0_12] : memref<1x128xf32, #tpu.memory_space<vmem>>, vector<1x128xf32>
    %9 = vector.shape_cast %8 : vector<1x128xf32> to vector<128xf32>
    %c0_13 = arith.constant 0 : index
    %c0_14 = arith.constant 0 : index
    %10 = vector.load %arg13[%c0_13, %c0_14] : memref<1x32xf32, #tpu.memory_space<vmem>>, vector<1x32xf32>
    %11 = vector.shape_cast %10 : vector<1x32xf32> to vector<32xf32>
    %c0_15 = arith.constant 0 : index
    %c0_16 = arith.constant 0 : index
    %12 = vector.load %arg2[%c0_15, %c0_16] : memref<1x32xf32, #tpu.memory_space<vmem>>, vector<1x32xf32>
    %13 = vector.shape_cast %12 : vector<1x32xf32> to vector<32xf32>
    %c0_17 = arith.constant 0 : index
    %c0_18 = arith.constant 0 : index
    %14 = vector.load %arg3[%c0_17, %c0_18] : memref<1x32xf32, #tpu.memory_space<vmem>>, vector<1x32xf32>
    %15 = vector.shape_cast %14 : vector<1x32xf32> to vector<32xf32>
    %c0_19 = arith.constant 0 : index
    %c0_20 = arith.constant 0 : index
    %16 = vector.load %arg8[%c0_19, %c0_20] : memref<1x32xf32, #tpu.memory_space<vmem>>, vector<1x32xf32>
    %17 = vector.shape_cast %16 : vector<1x32xf32> to vector<32xf32>
    %c0_21 = arith.constant 0 : index
    %c0_22 = arith.constant 0 : index
    %18 = vector.load %arg9[%c0_21, %c0_22] : memref<1x32xf32, #tpu.memory_space<vmem>>, vector<1x32xf32>
    %19 = vector.shape_cast %18 : vector<1x32xf32> to vector<32xf32>
    %c0_23 = arith.constant 0 : index
    %c0_24 = arith.constant 0 : index
    %c0_25 = arith.constant 0 : index
    %20 = vector.load %arg1[%c0_23, %c0_24, %c0_25] : memref<1x8x32xf32, #tpu.memory_space<vmem>>, vector<1x8x32xf32>
    %21 = vector.shape_cast %20 : vector<1x8x32xf32> to vector<8x32xf32>
    %cst = arith.constant dense<0.000000e+00> : vector<8xf32>
    %22 = vector.multi_reduction <add>, %21, %cst [1] : vector<8x32xf32> to vector<8xf32>
    %23 = vector.shape_cast %22 : vector<8xf32> to vector<8x1xf32>
    %cst_26 = arith.constant 3.200000e+01 : f32
    %24 = vector.broadcast %cst_26 : f32 to vector<8x1xf32>
    %25 = arith.divf %23, %24 : vector<8x1xf32>
    %26 = vector.broadcast %25 : vector<8x1xf32> to vector<8x32xf32>
    %27 = arith.subf %21, %26 : vector<8x32xf32>
    %28 = arith.mulf %27, %27 : vector<8x32xf32>
    %cst_27 = arith.constant dense<0.000000e+00> : vector<8xf32>
    %29 = vector.multi_reduction <add>, %28, %cst_27 [1] : vector<8x32xf32> to vector<8xf32>
    %30 = vector.shape_cast %29 : vector<8xf32> to vector<8x1xf32>
    %cst_28 = arith.constant 3.200000e+01 : f32
    %31 = vector.broadcast %cst_28 : f32 to vector<8x1xf32>
    %32 = arith.divf %30, %31 : vector<8x1xf32>
    %33 = vector.broadcast %25 : vector<8x1xf32> to vector<8x32xf32>
    %34 = arith.subf %21, %33 : vector<8x32xf32>
    %cst_29 = arith.constant 9.99999974E-6 : f32
    %35 = vector.broadcast %cst_29 : f32 to vector<8x1xf32>
    %36 = arith.addf %32, %35 : vector<8x1xf32>
    %37 = math.rsqrt %36 : vector<8x1xf32>
    %38 = vector.broadcast %37 : vector<8x1xf32> to vector<8x32xf32>
    %39 = arith.mulf %34, %38 : vector<8x32xf32>
    %40 = vector.shape_cast %13 : vector<32xf32> to vector<1x32xf32>
    %41 = vector.broadcast %40 : vector<1x32xf32> to vector<8x32xf32>
    %42 = arith.mulf %39, %41 : vector<8x32xf32>
    %43 = vector.shape_cast %15 : vector<32xf32> to vector<1x32xf32>
    %44 = vector.broadcast %43 : vector<1x32xf32> to vector<8x32xf32>
    %45 = arith.addf %42, %44 : vector<8x32xf32>
    %46 = arith.truncf %45 : vector<8x32xf32> to vector<8x32xbf16>
    %cst_30 = arith.constant dense<0.000000e+00> : vector<8x96xf32>
    %47 = tpu.matmul %46, %0, %cst_30 {dimension_numbers = #tpu.dot_dimension_numbers<[1], [0], [0], [1], [0, 0, 1, 1], [], []>} : vector<8x32xbf16>, vector<32x96xbf16>, vector<8x96xf32> -> vector<8x96xf32>
    %48 = vector.shape_cast %5 : vector<96xf32> to vector<1x96xf32>
    %49 = vector.broadcast %48 : vector<1x96xf32> to vector<8x96xf32>
    %50 = arith.addf %47, %49 : vector<8x96xf32>
    %51 = arith.truncf %50 : vector<8x96xf32> to vector<8x96xbf16>
    %52 = vector.extract_strided_slice %51 {offsets = [0, 0], sizes = [8, 8], strides = [1, 1]} : vector<8x96xbf16> to vector<8x8xbf16>
    %53 = vector.extract_strided_slice %51 {offsets = [0, 32], sizes = [8, 8], strides = [1, 1]} : vector<8x96xbf16> to vector<8x8xbf16>
    %54 = vector.extract_strided_slice %51 {offsets = [0, 64], sizes = [8, 8], strides = [1, 1]} : vector<8x96xbf16> to vector<8x8xbf16>
    %cst_31 = arith.constant dense<0.000000e+00> : vector<8x8xf32>
    %55 = tpu.matmul %52, %53, %cst_31 {dimension_numbers = #tpu.dot_dimension_numbers<[1], [1], [0], [0], [0, 0, 1, 0], [], []>} : vector<8x8xbf16>, vector<8x8xbf16>, vector<8x8xf32> -> vector<8x8xf32>
    %cst_32 = arith.constant dense<0xFF800000> : vector<8xf32>
    %56 = vector.multi_reduction <maximumf>, %55, %cst_32 [1] : vector<8x8xf32> to vector<8xf32>
    %57 = vector.shape_cast %56 : vector<8xf32> to vector<8x1xf32>
    %58 = vector.broadcast %57 : vector<8x1xf32> to vector<8x8xf32>
    %59 = arith.subf %55, %58 : vector<8x8xf32>
    %60 = math.exp %59 : vector<8x8xf32>
    %cst_33 = arith.constant dense<0.000000e+00> : vector<8xf32>
    %61 = vector.multi_reduction <add>, %60, %cst_33 [1] : vector<8x8xf32> to vector<8xf32>
    %62 = vector.shape_cast %61 : vector<8xf32> to vector<8x1xf32>
    %63 = arith.truncf %60 : vector<8x8xf32> to vector<8x8xbf16>
    %cst_34 = arith.constant dense<0.000000e+00> : vector<8x8xf32>
    %64 = tpu.matmul %63, %54, %cst_34 {dimension_numbers = #tpu.dot_dimension_numbers<[1], [0], [0], [1], [0, 0, 1, 1], [], []>} : vector<8x8xbf16>, vector<8x8xbf16>, vector<8x8xf32> -> vector<8x8xf32>
    %65 = tpu.reciprocal %62 {approx = true} : vector<8x1xf32> -> vector<8x1xf32>
    %66 = vector.broadcast %65 : vector<8x1xf32> to vector<8x8xf32>
    %67 = arith.mulf %64, %66 : vector<8x8xf32>
    %c0_35 = arith.constant 0 : index
    %c0_36 = arith.constant 0 : index
    %68 = vector.load %arg15[%c0_35, %c0_36] : memref<8x32xf32, #tpu.memory_space<vmem>>, vector<8x8xf32>
    tpu.vector_store %arg15[%c0_35, %c0_36], %67 {strides = array<i32>} : memref<8x32xf32, #tpu.memory_space<vmem>>, vector<8x8xf32>,
    %69 = vector.extract_strided_slice %51 {offsets = [0, 8], sizes = [8, 8], strides = [1, 1]} : vector<8x96xbf16> to vector<8x8xbf16>
    %70 = vector.extract_strided_slice %51 {offsets = [0, 40], sizes = [8, 8], strides = [1, 1]} : vector<8x96xbf16> to vector<8x8xbf16>
    %71 = vector.extract_strided_slice %51 {offsets = [0, 72], sizes = [8, 8], strides = [1, 1]} : vector<8x96xbf16> to vector<8x8xbf16>
    %cst_37 = arith.constant dense<0.000000e+00> : vector<8x8xf32>
    %72 = tpu.matmul %69, %70, %cst_37 {dimension_numbers = #tpu.dot_dimension_numbers<[1], [1], [0], [0], [0, 0, 1, 0], [], []>} : vector<8x8xbf16>, vector<8x8xbf16>, vector<8x8xf32> -> vector<8x8xf32>
    %cst_38 = arith.constant dense<0xFF800000> : vector<8xf32>
    %73 = vector.multi_reduction <maximumf>, %72, %cst_38 [1] : vector<8x8xf32> to vector<8xf32>
    %74 = vector.shape_cast %73 : vector<8xf32> to vector<8x1xf32>
    %75 = vector.broadcast %74 : vector<8x1xf32> to vector<8x8xf32>
    %76 = arith.subf %72, %75 : vector<8x8xf32>
    %77 = math.exp %76 : vector<8x8xf32>
    %cst_39 = arith.constant dense<0.000000e+00> : vector<8xf32>
    %78 = vector.multi_reduction <add>, %77, %cst_39 [1] : vector<8x8xf32> to vector<8xf32>
    %79 = vector.shape_cast %78 : vector<8xf32> to vector<8x1xf32>
    %80 = arith.truncf %77 : vector<8x8xf32> to vector<8x8xbf16>
    %cst_40 = arith.constant dense<0.000000e+00> : vector<8x8xf32>
    %81 = tpu.matmul %80, %71, %cst_40 {dimension_numbers = #tpu.dot_dimension_numbers<[1], [0], [0], [1], [0, 0, 1, 1], [], []>} : vector<8x8xbf16>, vector<8x8xbf16>, vector<8x8xf32> -> vector<8x8xf32>
    %82 = tpu.reciprocal %79 {approx = true} : vector<8x1xf32> -> vector<8x1xf32>
    %83 = vector.broadcast %82 : vector<8x1xf32> to vector<8x8xf32>
    %84 = arith.mulf %81, %83 : vector<8x8xf32>
    %c0_41 = arith.constant 0 : index
    %c8 = arith.constant 8 : index
    %85 = vector.load %arg15[%c0_41, %c8] : memref<8x32xf32, #tpu.memory_space<vmem>>, vector<8x8xf32>
    tpu.vector_store %arg15[%c0_41, %c8], %84 {strides = array<i32>} : memref<8x32xf32, #tpu.memory_space<vmem>>, vector<8x8xf32>,
    %86 = vector.extract_strided_slice %51 {offsets = [0, 16], sizes = [8, 8], strides = [1, 1]} : vector<8x96xbf16> to vector<8x8xbf16>
    %87 = vector.extract_strided_slice %51 {offsets = [0, 48], sizes = [8, 8], strides = [1, 1]} : vector<8x96xbf16> to vector<8x8xbf16>
    %88 = vector.extract_strided_slice %51 {offsets = [0, 80], sizes = [8, 8], strides = [1, 1]} : vector<8x96xbf16> to vector<8x8xbf16>
    %cst_42 = arith.constant dense<0.000000e+00> : vector<8x8xf32>
    %89 = tpu.matmul %86, %87, %cst_42 {dimension_numbers = #tpu.dot_dimension_numbers<[1], [1], [0], [0], [0, 0, 1, 0], [], []>} : vector<8x8xbf16>, vector<8x8xbf16>, vector<8x8xf32> -> vector<8x8xf32>
    %cst_43 = arith.constant dense<0xFF800000> : vector<8xf32>
    %90 = vector.multi_reduction <maximumf>, %89, %cst_43 [1] : vector<8x8xf32> to vector<8xf32>
    %91 = vector.shape_cast %90 : vector<8xf32> to vector<8x1xf32>
    %92 = vector.broadcast %91 : vector<8x1xf32> to vector<8x8xf32>
    %93 = arith.subf %89, %92 : vector<8x8xf32>
    %94 = math.exp %93 : vector<8x8xf32>
    %cst_44 = arith.constant dense<0.000000e+00> : vector<8xf32>
    %95 = vector.multi_reduction <add>, %94, %cst_44 [1] : vector<8x8xf32> to vector<8xf32>
    %96 = vector.shape_cast %95 : vector<8xf32> to vector<8x1xf32>
    %97 = arith.truncf %94 : vector<8x8xf32> to vector<8x8xbf16>
    %cst_45 = arith.constant dense<0.000000e+00> : vector<8x8xf32>
    %98 = tpu.matmul %97, %88, %cst_45 {dimension_numbers = #tpu.dot_dimension_numbers<[1], [0], [0], [1], [0, 0, 1, 1], [], []>} : vector<8x8xbf16>, vector<8x8xbf16>, vector<8x8xf32> -> vector<8x8xf32>
    %99 = tpu.reciprocal %96 {approx = true} : vector<8x1xf32> -> vector<8x1xf32>
    %100 = vector.broadcast %99 : vector<8x1xf32> to vector<8x8xf32>
    %101 = arith.mulf %98, %100 : vector<8x8xf32>
    %c0_46 = arith.constant 0 : index
    %c16 = arith.constant 16 : index
    %102 = vector.load %arg15[%c0_46, %c16] : memref<8x32xf32, #tpu.memory_space<vmem>>, vector<8x8xf32>
    tpu.vector_store %arg15[%c0_46, %c16], %101 {strides = array<i32>} : memref<8x32xf32, #tpu.memory_space<vmem>>, vector<8x8xf32>,
    %103 = vector.extract_strided_slice %51 {offsets = [0, 24], sizes = [8, 8], strides = [1, 1]} : vector<8x96xbf16> to vector<8x8xbf16>
    %104 = vector.extract_strided_slice %51 {offsets = [0, 56], sizes = [8, 8], strides = [1, 1]} : vector<8x96xbf16> to vector<8x8xbf16>
    %105 = vector.extract_strided_slice %51 {offsets = [0, 88], sizes = [8, 8], strides = [1, 1]} : vector<8x96xbf16> to vector<8x8xbf16>
    %cst_47 = arith.constant dense<0.000000e+00> : vector<8x8xf32>
    %106 = tpu.matmul %103, %104, %cst_47 {dimension_numbers = #tpu.dot_dimension_numbers<[1], [1], [0], [0], [0, 0, 1, 0], [], []>} : vector<8x8xbf16>, vector<8x8xbf16>, vector<8x8xf32> -> vector<8x8xf32>
    %cst_48 = arith.constant dense<0xFF800000> : vector<8xf32>
    %107 = vector.multi_reduction <maximumf>, %106, %cst_48 [1] : vector<8x8xf32> to vector<8xf32>
    %108 = vector.shape_cast %107 : vector<8xf32> to vector<8x1xf32>
    %109 = vector.broadcast %108 : vector<8x1xf32> to vector<8x8xf32>
    %110 = arith.subf %106, %109 : vector<8x8xf32>
    %111 = math.exp %110 : vector<8x8xf32>
    %cst_49 = arith.constant dense<0.000000e+00> : vector<8xf32>
    %112 = vector.multi_reduction <add>, %111, %cst_49 [1] : vector<8x8xf32> to vector<8xf32>
    %113 = vector.shape_cast %112 : vector<8xf32> to vector<8x1xf32>
    %114 = arith.truncf %111 : vector<8x8xf32> to vector<8x8xbf16>
    %cst_50 = arith.constant dense<0.000000e+00> : vector<8x8xf32>
    %115 = tpu.matmul %114, %105, %cst_50 {dimension_numbers = #tpu.dot_dimension_numbers<[1], [0], [0], [1], [0, 0, 1, 1], [], []>} : vector<8x8xbf16>, vector<8x8xbf16>, vector<8x8xf32> -> vector<8x8xf32>
    %116 = tpu.reciprocal %113 {approx = true} : vector<8x1xf32> -> vector<8x1xf32>
    %117 = vector.broadcast %116 : vector<8x1xf32> to vector<8x8xf32>
    %118 = arith.mulf %115, %117 : vector<8x8xf32>
    %c0_51 = arith.constant 0 : index
    %c24 = arith.constant 24 : index
    %119 = vector.load %arg15[%c0_51, %c24] : memref<8x32xf32, #tpu.memory_space<vmem>>, vector<8x8xf32>
    tpu.vector_store %arg15[%c0_51, %c24], %118 {strides = array<i32>} : memref<8x32xf32, #tpu.memory_space<vmem>>, vector<8x8xf32>,
    %c0_52 = arith.constant 0 : index
    %c0_53 = arith.constant 0 : index
    %120 = vector.load %arg15[%c0_52, %c0_53] : memref<8x32xf32, #tpu.memory_space<vmem>>, vector<8x32xf32>
    %121 = arith.truncf %120 : vector<8x32xf32> to vector<8x32xbf16>
    %cst_54 = arith.constant dense<0.000000e+00> : vector<8x32xf32>
    %122 = tpu.matmul %121, %1, %cst_54 {dimension_numbers = #tpu.dot_dimension_numbers<[1], [0], [0], [1], [0, 0, 1, 1], [], []>} : vector<8x32xbf16>, vector<32x32xbf16>, vector<8x32xf32> -> vector<8x32xf32>
    %123 = arith.addf %21, %122 : vector<8x32xf32>
    %124 = vector.shape_cast %7 : vector<32xf32> to vector<1x32xf32>
    %125 = vector.broadcast %124 : vector<1x32xf32> to vector<8x32xf32>
    %126 = arith.addf %123, %125 : vector<8x32xf32>
    %cst_55 = arith.constant dense<0.000000e+00> : vector<8xf32>
    %127 = vector.multi_reduction <add>, %126, %cst_55 [1] : vector<8x32xf32> to vector<8xf32>
    %128 = vector.shape_cast %127 : vector<8xf32> to vector<8x1xf32>
    %cst_56 = arith.constant 3.200000e+01 : f32
    %129 = vector.broadcast %cst_56 : f32 to vector<8x1xf32>
    %130 = arith.divf %128, %129 : vector<8x1xf32>
    %131 = vector.broadcast %130 : vector<8x1xf32> to vector<8x32xf32>
    %132 = arith.subf %126, %131 : vector<8x32xf32>
    %133 = arith.mulf %132, %132 : vector<8x32xf32>
    %cst_57 = arith.constant dense<0.000000e+00> : vector<8xf32>
    %134 = vector.multi_reduction <add>, %133, %cst_57 [1] : vector<8x32xf32> to vector<8xf32>
    %135 = vector.shape_cast %134 : vector<8xf32> to vector<8x1xf32>
    %cst_58 = arith.constant 3.200000e+01 : f32
    %136 = vector.broadcast %cst_58 : f32 to vector<8x1xf32>
    %137 = arith.divf %135, %136 : vector<8x1xf32>
    %138 = vector.broadcast %130 : vector<8x1xf32> to vector<8x32xf32>
    %139 = arith.subf %126, %138 : vector<8x32xf32>
    %cst_59 = arith.constant 9.99999974E-6 : f32
    %140 = vector.broadcast %cst_59 : f32 to vector<8x1xf32>
    %141 = arith.addf %137, %140 : vector<8x1xf32>
    %142 = math.rsqrt %141 : vector<8x1xf32>
    %143 = vector.broadcast %142 : vector<8x1xf32> to vector<8x32xf32>
    %144 = arith.mulf %139, %143 : vector<8x32xf32>
    %145 = vector.shape_cast %17 : vector<32xf32> to vector<1x32xf32>
    %146 = vector.broadcast %145 : vector<1x32xf32> to vector<8x32xf32>
    %147 = arith.mulf %144, %146 : vector<8x32xf32>
    %148 = vector.shape_cast %19 : vector<32xf32> to vector<1x32xf32>
    %149 = vector.broadcast %148 : vector<1x32xf32> to vector<8x32xf32>
    %150 = arith.addf %147, %149 : vector<8x32xf32>
    %151 = arith.truncf %150 : vector<8x32xf32> to vector<8x32xbf16>
    %cst_60 = arith.constant dense<0.000000e+00> : vector<8x128xf32>
    %152 = tpu.matmul %151, %2, %cst_60 {dimension_numbers = #tpu.dot_dimension_numbers<[1], [0], [0], [1], [0, 0, 1, 1], [], []>} : vector<8x32xbf16>, vector<32x128xbf16>, vector<8x128xf32> -> vector<8x128xf32>
    %153 = vector.shape_cast %9 : vector<128xf32> to vector<1x128xf32>
    %154 = vector.broadcast %153 : vector<1x128xf32> to vector<8x128xf32>
    %155 = arith.addf %152, %154 : vector<8x128xf32>
    %cst_61 = arith.constant 5.000000e-01 : f32
    %156 = vector.broadcast %cst_61 : f32 to vector<8x128xf32>
    %157 = arith.mulf %156, %155 : vector<8x128xf32>
    %cst_62 = arith.constant 4.471500e-02 : f32
    %158 = vector.broadcast %cst_62 : f32 to vector<8x128xf32>
    %159 = arith.mulf %158, %155 : vector<8x128xf32>
    %160 = arith.mulf %159, %155 : vector<8x128xf32>
    %161 = arith.mulf %160, %155 : vector<8x128xf32>
    %162 = arith.addf %155, %161 : vector<8x128xf32>
    %cst_63 = arith.constant 0.797884583 : f32
    %163 = vector.broadcast %cst_63 : f32 to vector<8x128xf32>
    %164 = arith.mulf %163, %162 : vector<8x128xf32>
    %165 = math.tanh %164 : vector<8x128xf32>
    %cst_64 = arith.constant 1.000000e+00 : f32
    %166 = vector.broadcast %cst_64 : f32 to vector<8x128xf32>
    %167 = arith.addf %166, %165 : vector<8x128xf32>
    %168 = arith.mulf %157, %167 : vector<8x128xf32>
    %169 = arith.truncf %168 : vector<8x128xf32> to vector<8x128xbf16>
    %cst_65 = arith.constant dense<0.000000e+00> : vector<8x32xf32>
    %170 = tpu.matmul %169, %3, %cst_65 {dimension_numbers = #tpu.dot_dimension_numbers<[1], [0], [0], [1], [0, 0, 1, 1], [], []>} : vector<8x128xbf16>, vector<128x32xbf16>, vector<8x32xf32> -> vector<8x32xf32>
    %171 = vector.shape_cast %11 : vector<32xf32> to vector<1x32xf32>
    %172 = vector.broadcast %171 : vector<1x32xf32> to vector<8x32xf32>
    %173 = arith.addf %170, %172 : vector<8x32xf32>
    %174 = arith.addf %126, %173 : vector<8x32xf32>
    %c0_66 = arith.constant 0 : index
    %c0_67 = arith.constant 0 : index
    %c0_68 = arith.constant 0 : index
    %175 = vector.load %arg14[%c0_66, %c0_67, %c0_68] : memref<1x8x32xf32, #tpu.memory_space<vmem>>, vector<1x8x32xf32>
    %176 = vector.shape_cast %175 : vector<1x8x32xf32> to vector<8x32xf32>
    %177 = vector.shape_cast %174 : vector<8x32xf32> to vector<1x8x32xf32>
    tpu.vector_store %arg14[%c0_66, %c0_67, %c0_68], %177 {strides = array<i32>} : memref<1x8x32xf32, #tpu.memory_space<vmem>>, vector<1x8x32xf32>,
    return
  }
  func.func @transform_0(%arg0: i32) -> (i32, i32, i32) {
    %c0_i32 = arith.constant 0 : i32
    %c0_i32_0 = arith.constant 0 : i32
    %c0_i32_1 = arith.constant 0 : i32
    return %arg0, %c0_i32, %c0_i32_0 : i32, i32, i32
  }
  func.func @transform_1(%arg0: i32) -> (i32, i32) {
    %c0_i32 = arith.constant 0 : i32
    %c0_i32_0 = arith.constant 0 : i32
    %c0_i32_1 = arith.constant 0 : i32
    return %c0_i32, %c0_i32_0 : i32, i32
  }
  func.func @transform_2(%arg0: i32) -> (i32, i32) {
    %c0_i32 = arith.constant 0 : i32
    %c0_i32_0 = arith.constant 0 : i32
    %c0_i32_1 = arith.constant 0 : i32
    return %c0_i32, %c0_i32_0 : i32, i32
  }
  func.func @transform_3(%arg0: i32) -> (i32, i32) {
    %c0_i32 = arith.constant 0 : i32
    %c0_i32_0 = arith.constant 0 : i32
    %c0_i32_1 = arith.constant 0 : i32
    return %c0_i32, %c0_i32_0 : i32, i32
  }
  func.func @transform_4(%arg0: i32) -> (i32, i32) {
    %c0_i32 = arith.constant 0 : i32
    %c0_i32_0 = arith.constant 0 : i32
    %c0_i32_1 = arith.constant 0 : i32
    return %c0_i32, %c0_i32_0 : i32, i32
  }
  func.func @transform_5(%arg0: i32) -> (i32, i32) {
    %c0_i32 = arith.constant 0 : i32
    %c0_i32_0 = arith.constant 0 : i32
    %c0_i32_1 = arith.constant 0 : i32
    return %c0_i32, %c0_i32_0 : i32, i32
  }
  func.func @transform_6(%arg0: i32) -> (i32, i32) {
    %c0_i32 = arith.constant 0 : i32
    %c0_i32_0 = arith.constant 0 : i32
    %c0_i32_1 = arith.constant 0 : i32
    return %c0_i32, %c0_i32_0 : i32, i32
  }
  func.func @transform_7(%arg0: i32) -> (i32, i32) {
    %c0_i32 = arith.constant 0 : i32
    %c0_i32_0 = arith.constant 0 : i32
    %c0_i32_1 = arith.constant 0 : i32
    return %c0_i32, %c0_i32_0 : i32, i32
  }
  func.func @transform_8(%arg0: i32) -> (i32, i32) {
    %c0_i32 = arith.constant 0 : i32
    %c0_i32_0 = arith.constant 0 : i32
    %c0_i32_1 = arith.constant 0 : i32
    return %c0_i32, %c0_i32_0 : i32, i32
  }
  func.func @transform_9(%arg0: i32) -> (i32, i32) {
    %c0_i32 = arith.constant 0 : i32
    %c0_i32_0 = arith.constant 0 : i32
    %c0_i32_1 = arith.constant 0 : i32
    return %c0_i32, %c0_i32_0 : i32, i32
  }
  func.func @transform_10(%arg0: i32) -> (i32, i32) {
    %c0_i32 = arith.constant 0 : i32
    %c0_i32_0 = arith.constant 0 : i32
    %c0_i32_1 = arith.constant 0 : i32
    return %c0_i32, %c0_i32_0 : i32, i32
  }
  func.func @transform_11(%arg0: i32) -> (i32, i32) {
    %c0_i32 = arith.constant 0 : i32
    %c0_i32_0 = arith.constant 0 : i32
    %c0_i32_1 = arith.constant 0 : i32
    return %c0_i32, %c0_i32_0 : i32, i32
  }
  func.func @transform_12(%arg0: i32) -> (i32, i32) {
    %c0_i32 = arith.constant 0 : i32
    %c0_i32_0 = arith.constant 0 : i32
    %c0_i32_1 = arith.constant 0 : i32
    return %c0_i32, %c0_i32_0 : i32, i32
  }
  func.func @transform_13(%arg0: i32) -> (i32, i32, i32) {
    %c0_i32 = arith.constant 0 : i32
    %c0_i32_0 = arith.constant 0 : i32
    %c0_i32_1 = arith.constant 0 : i32
    return %arg0, %c0_i32, %c0_i32_0 : i32, i32, i32
  }
}

</mosaic_0001>

<bundles_post_ra>
// kernel: tpu_custom_call.1
= control target key start
LH: loop header
LB: loop body
LE: loop exit
PB: predicated region body
PF: predicated region fallthrough
CT: control target
= control target key end

     0   :  { %s1578_s0 = inlined_call_operand.vmem [shape: f32[2,8,32], index: 0, kind: input, shape index: {}]   ;;  %s1579_s1 = inlined_call_operand.vmem [shape: f32[1,32], index: 1, kind: input, shape index: {}]   ;;  %s1580_s2 = inlined_call_operand.vmem [shape: f32[1,32], index: 2, kind: input, shape index: {}]   ;;  %s1581_s3 = inlined_call_operand.vmem [shape: bf16[32,96], index: 3, kind: input, shape index: {}]   ;;  %s1582_s4 = inlined_call_operand.vmem [shape: f32[1,96], index: 4, kind: input, shape index: {}]   ;;  %s1583_s5 = inlined_call_operand.vmem [shape: bf16[32,32], index: 5, kind: input, shape index: {}]   ;;  %s1584_s6 = inlined_call_operand.vmem [shape: f32[1,32], index: 6, kind: input, shape index: {}]   ;;  %s1585_s7 = inlined_call_operand.vmem [shape: f32[1,32], index: 7, kind: input, shape index: {}]   ;;  %s1586_s8 = inlined_call_operand.vmem [shape: f32[1,32], index: 8, kind: input, shape index: {}]   ;;  %s1587_s9 = inlined_call_operand.vmem [shape: bf16[32,128], index: 9, kind: input, shape index: {}]   ;;  %s1588_s10 = inlined_call_operand.vmem [shape: f32[1,128], index: 10, kind: input, shape index: {}]   ;;  %s1589_s11 = inlined_call_operand.vmem [shape: bf16[128,32], index: 11, kind: input, shape index: {}]   ;;  %s1590_s12 = inlined_call_operand.vmem [shape: f32[1,32], index: 12, kind: input, shape index: {}]   ;;  %s1591_s13 = inlined_call_operand.hbm [shape: f32[2,8,32], index: 13, kind: output, shape index: {}]  }
   0x1   :  { %1592 = sst [smem:[#allocation6_spill]] %s1578_s0 }
   0x2   :  { %1593 = sst [smem:[#allocation7_spill]] %s1579_s1 }
   0x3   :  { %1594 = sst [smem:[#allocation8_spill]] %s1580_s2 }
   0x4   :  { %1595 = sst [smem:[#allocation9_spill]] %s1581_s3 }
   0x5   :  { %18 = vsyncpa [#allocation4], 0 }
   0x6   :  { %20 = vsyncpa [#allocation4 + $0x1], 0  ;;  %s1365_s25 = smov 0   ;;  %s1367_s26 = smov 0  }
   0x7   :  { %s1369_s27 = smov 0   ;;  %s1371_s28 = smov 0  }
   0x8 LB: > { %s1386_s29 = sadd.s32 4294967295, %s1278_s28   ;;  %s1039_s30 = sadd.s32 4294967294, %s1278_s28   ;;  %s1278_s28 = sphi %s1371_s28, %s1605_s28   ;;  %s1274_s27 = sphi %s1369_s27, %s1604_s27   ;;  %s1270_s26 = sphi %s1367_s26, %s1603_s26   ;;  %s1266_s25 = sphi %s1365_s25, %s1602_s25  }
   0x9   : > { %s1390_s14 = sadd.s32 1, %s1278_s28   ;;  %s311_s15 = sadd.s32 1, %s1274_s27 }
   0xa   : > { %s308_s16 = ssub.s32 %s1278_s28, %s1390_s14  ;;  %p321_p0 = scmp.ne.s32.totalorder %s1274_s27, %s1270_s26 }
   0xb   : > { %p309_p1 = scmp.eq.s32.totalorder %s308_s16, 0  ;;  %p322_p2 = scmp.eq.s32.totalorder %s1386_s29, 1 }
   0xc   : > { %p327_p3 = scmp.ne.s32.totalorder %s1270_s26, %s1266_s25  ;;  %p328_p4 = scmp.eq.s32.totalorder %s1039_s30, 1 }
   0xd   : > { %s1401_s17 = scalar_select %p309_p1, %s1274_s27, %s311_s15  }
   0xe   : > { %p1403_p5 = por %p322_p2, %p321_p0  ;;  %p1407_p6 = por %p328_p4, %p327_p3 }
   0xf   : > { %p1042_p7 = scmp.ge.s32.totalorder %s1278_s28, 1  ;;  %p389_p8 = scmp.lt.s32.totalorder %s1278_s28, 3 }
  0x11   : > { %p390_p9 = pnand %p1042_p7, %p389_p8 }
  0x12   : > { %p432_p10 = scmp.lt.s32.totalorder (!%p390_p9), %s1386_s29, 1  ;;  %s1598_s0 = sld [smem:[#allocation6_spill]] (!%p390_p9) }
  0x13   : > { %393 = sbr.rel (%p390_p9) target bundleno = 2057 (0x809), region = 72  ;;  %s1599_s3 = sld [smem:[#allocation9_spill]] (!%p390_p9) }
  0x14   : > { %s1600_s1 = sld [smem:[#allocation7_spill]] (!%p390_p9)  ;;  %s1281_s16 = smov (!%p390_p9), 120  }
  0x15   : > { %s1601_s2 = sld [smem:[#allocation8_spill]] (!%p390_p9)  ;;  %s1284_s22 = smov (!%p390_p9), 112  }
  0x16   : > { %s1285_s23 = smov (!%p390_p9), 88   ;;  %s1287_s30 = smov (!%p390_p9), 72  }
  0x17   : > { %s1288_s15 = smov (!%p390_p9), 104  }
  0x18   : > { %s433_s20 = scalar_select %p432_p10, %s1386_s29, 1  ;;  %vm474_vm0 = vcmask 261120   ;;  %v1280_v2 = vmov 32.0   ;;  %v1186_v32 = vld [vmem:[%s1582_s4] ss:$0 sm:$0xff]  ;;  %vm585_vm5 = vcmask 1043456  }
  0x19   : > { %1192 = vrcp.f32 %v1280_v2  ;;  %v1117_v14 = vld [vmem:[%s1599_s3 + $0x8] sm:$0xff]  ;;  %v1116_v15 = vld [vmem:[%s1599_s3] sm:$0xff]  ;;  %vm550_vm6 = vcmask 64512   ;;  %vm665_vm7 = vcmask 130112   ;;  %vm727_vm8 = vcmask 195712  }
  0x1a   : > { %s1044_s21 = sshll.u32 %s433_s20, 3  ;;  %537 = vmatpush.bf16.msra.mxu0 %v1117_v14  ;;  %v1184_v25 = vld [vmem:[%s1600_s1] ss:$0 sm:$0xff]  ;;  %s1282_s20 = smov 64   ;;  %vm789_vm9 = vcmask 261312  }
  0x1b   : > { %s435_s24 = scalar_lea.vmem %s1598_s0, %s1044_s21  ;;  %v1185_v28 = vld [vmem:[%s1601_s2] ss:$0 sm:$0xff]  ;;  %s1283_s21 = smov 96  }
  0x1c   : > { %v1418_v0 = vld [vmem:[%s435_s24] sm:$0xff]  ;;  %s1286_s24 = smov 56   ;;  %s429_s0 = sand.u32 1, %s1270_s26  }
  0x1d   : > { %v475_v1 = vsel %vm474_vm0, %v1418_v0, 0.0  ;;  %s1043_s1 = sshll.u32 %s429_s0, 3 }
  0x1e   : > { %476 = vadd.xlane.f32.xlu0 %v475_v1  ;;  %538 = vmatpush.bf16.msra.mxu0 %v1116_v15 }
  0x1f   : > { %v1193_v3 = vpop.eup %1192 }
  0x20   : > { %v479_v4 = vmul.f32 32.0, %v1193_v3  ;;  %vm483_vm1 = vweird.f32 %v1193_v3 }
  0x22   : > { %v480_v5 = vsub.f32 1.0, %v479_v4 }
  0x24   : > { %v481_v6 = vmul.f32 %v1193_v3, %v480_v5 }
  0x26   : > { %v482_v7 = vadd.f32 %v1193_v3, %v481_v6 }
  0x28   : > { %v1422_v8 = vsel %vm483_vm1, %v1193_v3, %v482_v7 }
  0x91   : > { %v477_v9 = vpop.xlane.xlu0 %476 }
  0x92   : > { %v485_v10 = vmul.f32 %v1422_v8, %v477_v9 }
  0x94   : > { %v486_v11 = vsub.f32 %v1418_v0, %v485_v10 }
  0x96   : > { %v487_v12 = vmul.f32 %v486_v11, %v486_v11 }
  0x98   : > { %v488_v13 = vsel %vm474_vm0, %v487_v12, 0.0 }
  0x99   : > { %489 = vadd.xlane.f32.xlu0 %v488_v13 }
 0x10c   : > { %v490_v16 = vpop.xlane.xlu0 %489 }
 0x10d   : > { %v491_v17 = vmul.f32 %v490_v16, %v1422_v8 }
 0x10f   : > { %v492_v18 = vadd.f32 1e-05, %v491_v17 }
 0x111   : > { %1194 = vrsqrt.f32 %v492_v18  ;;  %vm499_vm3 = vweird.f32 %v492_v18 }
 0x117   : > { %v1195_v19 = vpop.eup %1194 }
 0x118   : > { %v494_v20 = vmul.f32 %v1195_v19, %v492_v18  ;;  %vm500_vm2 = vweird.f32 %v1195_v19 }
 0x119   : > { %vm501_vm4 = vmor %vm499_vm3, %vm500_vm2 }
 0x11a   : > { %v495_v21 = vmul.f32 %v1195_v19, %v494_v20 }
 0x11c   : > { %v496_v22 = vmul.f32 0.5, %v495_v21 }
 0x11e   : > { %v497_v23 = vsub.f32 1.5, %v496_v22 }
 0x120   : > { %v498_v24 = vmul.f32 %v1195_v19, %v497_v23 }
 0x122   : > { %v502_v26 = vsel %vm501_vm4, %v1195_v19, %v498_v24 }
 0x123   : > { %v503_v27 = vmul.f32 %v502_v26, %v486_v11 }
 0x125   : > { %v507_v29 = vmul.f32 %v1184_v25, %v503_v27 }
 0x127   : > { %v511_v30 = vadd.f32 %v1185_v28, %v507_v29 }
 0x129   : > { %v512_v31 = vpack.c.bf16 %v511_v30, %v511_v30 }
 0x12b   : > { %1053 = vmatmul.msk.bf16.vlgmr.msra.gmra.mxu0 %vm474_vm0, %v512_v31 }
 0x1a8   : > { %v540_v33 = vpop.f32.mrf.mxu0 }
 0x1a9   : > { %v541_v34 = vadd.f32 %v1186_v32, %v540_v33 }
 0x1ab   : > { %v544_v35 = vpack.c.bf16 %v541_v34, %v541_v34 }
 0x1ad   : > { %v546_v36 = vunpack.c.l.b16 %v544_v35 }
 0x1af   : > { %v1444_v37 = vpack.c.b16 %v546_v36, %v546_v36 }
 0x1b0   : > { %v542_v38 = vpop.f32.mrf.mxu0 }
 0x1b1   : > { %605 = vrot.lane.b32.xlu0 %v1444_v37, %s1281_s16  ;;  %580 = vrot.lane.b32.xlu2 %v1444_v37, %s1282_s20  ;;  %s1289_s16 = smov 80   ;;  %s1290_s20 = smov 40  }
 0x1b2   : > { %548 = vrot.lane.b32.xlu1 %v1444_v37, %s1283_s21  ;;  %s1291_s21 = smov 48  }
 0x1b9   : > { %667 = vrot.lane.b32.xlu0 %v1444_v37, %s1284_s22  ;;  %607 = vrot.lane.b32.xlu2 %v1444_v37, %s1285_s23  ;;  %s1292_s22 = smov 16   ;;  %s1293_s23 = smov 8  }
 0x1c1   : > { %638 = vrot.lane.b32.xlu0 %v1444_v37, %s1286_s24  ;;  %731 = vrot.lane.b32.xlu2 %v1444_v37, %s1287_s30  ;;  %s1294_s24 = smov 24  }
 0x1c9   : > { %729 = vrot.lane.b32.xlu2 %v1444_v37, %s1288_s15 }
 0x1d1   : > { %669 = vrot.lane.b32.xlu2 %v1444_v37, %s1289_s16 }
 0x20b   : > { %v581_v39 = vpop.permute.xlu2 %580 }
 0x20c   : > { %v587_v40 = vsel %vm585_vm5, %v581_v39, 0 }
 0x20d   : > { %596 = vmatpush.bf16.msra.mxu2 %v587_v40 }
 0x213   : > { %v608_v41 = vpop.permute.xlu2 %607 }
 0x214   : > { %v613_v42 = vsel %vm550_vm6, %v608_v41, 0 }
 0x215   : > { %622 = vmatpush.bf16.xpose.msrb.mxu2 %v613_v42 }
 0x21b   : > { %v732_v43 = vpop.permute.xlu2 %731 }
 0x21c   : > { %v737_v44 = vsel %vm550_vm6, %v732_v43, 0 }
 0x21d   : > { %746 = vmatpush.bf16.xpose.msra.mxu3 %v737_v44 }
 0x223   : > { %v730_v45 = vpop.permute.xlu2 %729  ;;  %v606_v48 = vpop.permute.xlu0 %605 }
 0x224   : > { %v549_v46 = vpop.permute.xlu1 %548  ;;  %1060 = vmatmul.msk.bf16.vlgmr.msra.gmra.mxu3 %vm550_vm6, %v730_v45 }
 0x225   : > { %v555_v47 = vsel %vm550_vm6, %v549_v46, 0 }
 0x226   : > { %564 = vmatpush.bf16.xpose.msra.mxu1 %v555_v47 }
 0x22b   : > { %v670_v49 = vpop.permute.xlu2 %669  ;;  %v668_v51 = vpop.permute.xlu0 %667 }
 0x22c   : > { %v675_v50 = vsel %vm550_vm6, %v670_v49, 0 }
 0x22d   : > { %1054 = vmatmul.msk.bf16.vlgmr.msra.gmra.mxu1 %vm550_vm6, %v544_v35  ;;  %684 = vmatpush.bf16.xpose.msrb.mxu0 %v675_v50 }
 0x233   : > { %v639_v61 = vpop.permute.xlu0 %638 }
 0x234   : > { %1058 = vmatmul.msk.bf16.vlgmr.msrb.gmra.mxu0 %vm550_vm6, %v668_v51  ;;  %v644_v10 = vsel %vm585_vm5, %v639_v61, 0 }
 0x2a7   : > { %v748_v52 = vpop.f32.mrf.mxu3 }
 0x2a8   : > { %v752_v59 = vsel %vm550_vm6, %v748_v52, -inf }
 0x2aa   : > { %v566_v53 = vpop.f32.mrf.mxu1 }
 0x2ab   : > { %v570_v54 = vsel %vm550_vm6, %v566_v53, -inf }
 0x2ac   : > { %571 = vmax.xlane.f32.xlu1 %v570_v54 }
 0x2af   : > { %v750_v55 = vpop.f32.mrf.mxu3 }
 0x2b1   : > { %v686_v56 = vpop.f32.mrf.mxu0 }
 0x2b2   : > { %v568_v57 = vpop.f32.mrf.mxu1  ;;  %v690_v58 = vsel %vm550_vm6, %v686_v56, -inf }
 0x2b3   : > { %691 = vmax.xlane.f32.xlu0 %v690_v58 }
 0x2b4   : > { %753 = vmax.xlane.f32.xlu1 %v752_v59  ;;  %v1187_v59 = vld [vmem:[%s1584_s6] ss:$0 sm:$0xff] }
 0x2b9   : > { %v688_v60 = vpop.f32.mrf.mxu0 }
 0x2cd   : > { %762 = vrot.lane.b32.xlu1 %v1444_v37, %s1290_s20 }
 0x31f   : > { %v572_v62 = vpop.xlane.xlu1 %571 }
 0x320   : > { %v573_v63 = vsub.f32 %v566_v53, %v572_v62  ;;  %v1118_v53 = vld [vmem:[%s1583_s5] sm:$0xff] }
 0x322   : > { %v574_v1 = vmul.f32 1.442695, %v573_v63 }
 0x324   : > { %1196 = vpow2.f32 %v574_v1 }
 0x326   : > { %v692_v2 = vpop.xlane.xlu0 %691 }
 0x327   : > { %v693_v3 = vsub.f32 %v686_v56, %v692_v2  ;;  %v754_v4 = vpop.xlane.xlu1 %753 }
 0x328   : > { %v755_v6 = vsub.f32 %v748_v52, %v754_v4  ;;  %v1119_v52 = vld [vmem:[%s1583_s5 + $0x8] sm:$0xff] }
 0x329   : > { %v694_v5 = vmul.f32 1.442695, %v693_v3  ;;  %814 = vmatpush.bf16.msra.mxu0 %v1119_v52 }
 0x32a   : > { %v1197_v7 = vpop.eup %1196  ;;  %v756_v11 = vmul.f32 1.442695, %v755_v6 }
 0x32b   : > { %1198 = vpow2.f32 %v694_v5  ;;  %v579_v9 = vpack.c.bf16 %v1197_v7, %v1197_v7  ;;  %v576_v23 = vsel %vm550_vm6, %v1197_v7, 0.0  ;;  %v1120_v7 = vld [vmem:[%s1587_s9] sm:$0xff] }
 0x32c   : > { %1200 = vpow2.f32 %v756_v11 }
 0x32d   : > { %1055 = vmatmul.msk.bf16.vlgmr.msra.gmra.mxu2 %vm550_vm6, %v579_v9  ;;  %815 = vmatpush.bf16.msra.mxu0 %v1118_v53  ;;  %v1129_v9 = vld [vmem:[%s1589_s11 + $0x38] sm:$0xff] }
 0x32e   : > { %653 = vmatpush.bf16.msra.mxu2 %v644_v10  ;;  %949 = vmatpush.bf16.msrb.mxu3 %v1129_v9 }
 0x331   : > { %v1199_v12 = vpop.eup %1198 }
 0x332   : > { %v696_v13 = vsel %vm550_vm6, %v1199_v12, 0.0  ;;  %v1201_v14 = vpop.eup %1200  ;;  %v699_v30 = vpack.c.bf16 %v1199_v12, %v1199_v12  ;;  %v1128_v12 = vld [vmem:[%s1589_s11 + $0x30] sm:$0xff] }
 0x333   : > { %697 = vadd.xlane.f32.xlu0 %v696_v13  ;;  %v758_v15 = vsel %vm550_vm6, %v1201_v14, 0.0  ;;  %v761_v33 = vpack.c.bf16 %v1201_v14, %v1201_v14  ;;  %950 = vmatpush.bf16.msrb.mxu3 %v1128_v12 }
 0x33b   : > { %759 = vadd.xlane.f32.xlu0 %v758_v15 }
 0x33d   : > { %1056 = vmatmul.msk.bf16.vlgmr.msrb.gmra.mxu2 %vm550_vm6, %v606_v48 }
 0x33f   : > { %v763_v16 = vpop.permute.xlu1 %762 }
 0x340   : > { %v768_v17 = vsel %vm585_vm5, %v763_v16, 0 }
 0x341   : > { %777 = vmatpush.bf16.msrb.mxu2 %v768_v17 }
 0x3b0   : > { %v598_v18 = vpop.f32.mrf.mxu2 }
 0x3b8   : > { %v600_v19 = vpop.f32.mrf.mxu2 }
 0x3c0   : > { %v624_v20 = vpop.f32.mrf.mxu2 }
 0x3c1   : > { %v628_v21 = vsel %vm550_vm6, %v624_v20, -inf }
 0x3c2   : > { %629 = vmax.xlane.f32.xlu2 %v628_v21 }
 0x3c8   : > { %v626_v22 = vpop.f32.mrf.mxu2 }
 0x3c9   : > { %v1189_v22 = vld [vmem:[%s1586_s8] ss:$0 sm:$0xff] }
 0x3da   : > { %700 = vrot.lane.b32.xlu2 %v1444_v37, %s1291_s21  ;;  %v698_v37 = vpop.xlane.xlu0 %697  ;;  %s431_s21 = scalar_lea.vmem [#allocation3], %s1043_s1  ;;  %s1236_s1 = scalar_lea.hbm %s1591_s13, 16 }
 0x3e2   : > { %v760_v46 = vpop.xlane.xlu0 %759 }
 0x403   : > { %577 = vadd.xlane.f32.xlu2 %v576_v23 }
 0x435   : > { %v630_v24 = vpop.xlane.xlu2 %629 }
 0x436   : > { %v631_v25 = vsub.f32 %v624_v20, %v630_v24 }
 0x438   : > { %v632_v26 = vmul.f32 1.442695, %v631_v25 }
 0x43a   : > { %1202 = vpow2.f32 %v632_v26  ;;  %v1127_v26 = vld [vmem:[%s1589_s11 + $0x28] sm:$0xff] }
 0x43b   : > { %951 = vmatpush.bf16.msrb.mxu3 %v1127_v26 }
 0x43d   : > { %v701_v27 = vpop.permute.xlu2 %700 }
 0x43e   : > { %v706_v28 = vsel %vm585_vm5, %v701_v27, 0  ;;  %v1126_v27 = vld [vmem:[%s1589_s11 + $0x20] sm:$0xff] }
 0x43f   : > { %715 = vmatpush.bf16.msrb.mxu1 %v706_v28  ;;  %952 = vmatpush.bf16.msrb.mxu3 %v1126_v27  ;;  %v1125_v28 = vld [vmem:[%s1589_s11 + $0x18] sm:$0xff] }
 0x440   : > { %v1203_v29 = vpop.eup %1202 }
 0x441   : > { %v637_v31 = vpack.c.bf16 %v1203_v29, %v1203_v29  ;;  %v634_v32 = vsel %vm550_vm6, %v1203_v29, 0.0  ;;  %v1124_v29 = vld [vmem:[%s1589_s11 + $0x10] sm:$0xff] }
 0x442   : > { %635 = vadd.xlane.f32.xlu1 %v634_v32  ;;  %1059 = vmatmul.msk.bf16.vlgmr.msrb.gmra.mxu1 %vm550_vm6, %v699_v30  ;;  %v1123_v30 = vld [vmem:[%s1589_s11 + $0x8] sm:$0xff]  ;;  %v1190_v32 = vld [vmem:[%s1588_s10] ss:$0 sm:$0xff] }
 0x443   : > { %1057 = vmatmul.msk.bf16.vlgmr.msra.gmra.mxu2 %vm550_vm6, %v637_v31  ;;  %953 = vmatpush.bf16.msrb.mxu3 %v1125_v28  ;;  %v1122_v31 = vld [vmem:[%s1589_s11] sm:$0xff] }
 0x447   : > { %954 = vmatpush.bf16.msrb.mxu3 %v1124_v29 }
 0x44b   : > { %955 = vmatpush.bf16.msrb.mxu3 %v1123_v30 }
 0x44f   : > { %956 = vmatpush.bf16.msrb.mxu3 %v1122_v31 }
 0x453   : > { %1061 = vmatmul.msk.bf16.vlgmr.msrb.gmra.mxu2 %vm550_vm6, %v761_v33 }
 0x476   : > { %v578_v34 = vpop.xlane.xlu2 %577 }
 0x477   : > { %1204 = vrcp.f32 %v578_v34 }
 0x478   : > { %1206 = vrcp.f32 %v698_v37 }
 0x47d   : > { %v1205_v35 = vpop.eup %1204 }
 0x47e   : > { %v603_v36 = vmul.f32 %v1205_v35, %v598_v18  ;;  %v1207_v39 = vpop.eup %1206 }
 0x480   : > { %604 = vst.msk [vmem:[#allocation2] sm:$0xff] %vm550_vm6, %v603_v36 }
 0x4b5   : > { %v636_v38 = vpop.xlane.xlu1 %635 }
 0x4b6   : > { %1208 = vrcp.f32 %v636_v38 }
 0x4b7   : > { %1210 = vrcp.f32 %v760_v46  ;;  %v1191_v46 = vld [vmem:[%s1590_s12] ss:$0 sm:$0xff] }
 0x4bc   : > { %v1209_v42 = vpop.eup %1208 }
 0x4bd   : > { %v1211_v48 = vpop.eup %1210 }
 0x4bf   : > { %v717_v40 = vpop.f32.mrf.mxu1 }
 0x4c0   : > { %v722_v41 = vmul.f32 %v1207_v39, %v717_v40 }
 0x4c2   : > { %724 = vrot.lane.b32.xlu1 %v722_v41, %s1292_s22  ;;  %s977_s22 = sshll.u32 %s431_s21, 4  ;;  %s978_s22 = int_to_ptr.vmem [resolvable:$true] %s977_s22 }
 0x4c6   : > { %v655_v43 = vpop.f32.mrf.mxu2 }
 0x4c7   : > { %v660_v44 = vmul.f32 %v1209_v42, %v655_v43  ;;  %v719_v45 = vpop.f32.mrf.mxu1 }
 0x4c9   : > { %662 = vrot.lane.b32.xlu0 %v660_v44, %s1293_s23  ;;  %s1113_s23 = sshll.u32 %s1386_s29, 3  ;;  %s965_s29 = scalar_lea.sflag [#allocation4], %s429_s0 }
 0x4ca   : > { %s975_s20 = scalar_lea.hbm %s1591_s13, %s1113_s23 }
 0x4cb   : > { %s979_s2 = sshll.u32 %s975_s20, 4  ;;  %s980_s2 = int_to_ptr.hbm [resolvable:$true] %s979_s2 }
 0x4cc   : > { %s1230_s3 = sshra.s32 %s980_s2, 4  ;;  %s1231_s3 = int_to_ptr.hbm [resolvable:$true] %s1230_s3 }
 0x4cd   : > { %p1237_p0 = scmp.lt.s32.totalorder %s1231_s3, %s1591_s13 }
 0x4ce   : > { %v657_v47 = vpop.f32.mrf.mxu2 }
 0x4d6   : > { %v779_v49 = vpop.f32.mrf.mxu2 }
 0x4d7   : > { %v784_v50 = vmul.f32 %v1211_v48, %v779_v49 }
 0x4d9   : > { %786 = vrot.lane.b32.xlu0 %v784_v50, %s1294_s24  ;;  %s1232_s24 = scalar_lea.hbm %s1231_s3, 8 }
 0x4da   : > { %p1233_p11 = scmp.ne.s32.totalorder %s1231_s3, %s1232_s24  ;;  %p1238_p1 = scmp.lt.s32.totalorder %s1236_s1, %s1232_s24 }
 0x4dc   : > { %p1234_p12 = pnand %p1233_p11, %p1403_p5  ;;  %p1239_p2 = por %p1238_p1, %p1237_p0 }
 0x4de   : > { %v781_v51 = vpop.f32.mrf.mxu2  ;;  %p1235_p13 = pneg %p1234_p12 }
 0x4e0   : > { %p1240_p3 = pnand %p1239_p2, %p1235_p13 }
 0x534   : > { %v725_v55 = vpop.permute.xlu1 %724 }
 0x53b   : > { %v663_v54 = vpop.permute.xlu0 %662 }
 0x53c   : > { %666 = vst.msk [vmem:[#allocation2] sm:$0xff] %vm665_vm7, %v663_v54 }
 0x53d   : > { %728 = vst.msk [vmem:[#allocation2] sm:$0xff] %vm727_vm8, %v725_v55 }
 0x54b   : > { %v787_v56 = vpop.permute.xlu0 %786 }
 0x54c   : > { %790 = vst.msk [vmem:[#allocation2] sm:$0xff] %vm789_vm9, %v787_v56 }
 0x553   : > { %v791_v57 = vld [vmem:[#allocation2] sm:$0xff] }
 0x554   : > { %v792_v58 = vpack.c.bf16 %v791_v57, %v791_v57 }
 0x556   : > { %1070 = vmatmul.msk.bf16.vlgmr.msra.gmra.mxu0 %vm474_vm0, %v792_v58 }
 0x5d3   : > { %v817_v60 = vpop.f32.mrf.mxu0 }
 0x5d4   : > { %v821_v61 = vadd.f32 %v817_v60, %v1418_v0  ;;  %v1121_v0 = vld [vmem:[%s1587_s9 + $0x8] sm:$0xff] }
 0x5d5   : > { %881 = vmatpush.bf16.msra.mxu1 %v1121_v0 }
 0x5d6   : > { %v1493_v62 = vadd.f32 %v1187_v59, %v821_v61 }
 0x5d8   : > { %v826_v63 = vsel %vm474_vm0, %v1493_v62, 0.0 }
 0x5d9   : > { %827 = vadd.xlane.f32.xlu0 %v826_v63  ;;  %882 = vmatpush.bf16.msra.mxu1 %v1120_v7 }
 0x5db   : > { %v819_v1 = vpop.f32.mrf.mxu0 }
 0x64c   : > { %v828_v2 = vpop.xlane.xlu0 %827 }
 0x64d   : > { %v829_v3 = vmul.f32 %v828_v2, %v1422_v8 }
 0x64f   : > { %v830_v4 = vsub.f32 %v1493_v62, %v829_v3 }
 0x651   : > { %v831_v5 = vmul.f32 %v830_v4, %v830_v4 }
 0x653   : > { %v832_v6 = vsel %vm474_vm0, %v831_v5, 0.0 }
 0x654   : > { %833 = vadd.xlane.f32.xlu2 %v832_v6 }
 0x6c7   : > { %v834_v10 = vpop.xlane.xlu2 %833 }
 0x6c8   : > { %v835_v11 = vmul.f32 %v834_v10, %v1422_v8  ;;  %v1188_v8 = vld [vmem:[%s1585_s7] ss:$0 sm:$0xff] }
 0x6ca   : > { %v836_v13 = vadd.f32 1e-05, %v835_v11 }
 0x6cc   : > { %1212 = vrsqrt.f32 %v836_v13  ;;  %vm843_vm11 = vweird.f32 %v836_v13 }
 0x6d2   : > { %v1213_v14 = vpop.eup %1212 }
 0x6d3   : > { %v838_v15 = vmul.f32 %v1213_v14, %v836_v13  ;;  %vm844_vm10 = vweird.f32 %v1213_v14 }
 0x6d4   : > { %vm845_vm12 = vmor %vm843_vm11, %vm844_vm10 }
 0x6d5   : > { %v839_v16 = vmul.f32 %v1213_v14, %v838_v15 }
 0x6d7   : > { %v840_v17 = vmul.f32 0.5, %v839_v16 }
 0x6d9   : > { %v841_v18 = vsub.f32 1.5, %v840_v17 }
 0x6db   : > { %v842_v19 = vmul.f32 %v1213_v14, %v841_v18 }
 0x6dd   : > { %v846_v20 = vsel %vm845_vm12, %v1213_v14, %v842_v19 }
 0x6de   : > { %v847_v21 = vmul.f32 %v846_v20, %v830_v4 }
 0x6e0   : > { %v851_v23 = vmul.f32 %v1188_v8, %v847_v21 }
 0x6e2   : > { %v855_v24 = vadd.f32 %v1189_v22, %v851_v23 }
 0x6e4   : > { %v856_v25 = vpack.c.bf16 %v855_v24, %v855_v24 }
 0x6e6   : > { %1079 = vmatmul.msk.bf16.vlgmr.msra.gmra.mxu1 %vm474_vm0, %v856_v25 }
 0x763   : > { %v884_v33 = vpop.f32.mrf.mxu1 }
 0x764   : > { %v885_v34 = vadd.f32 %v1190_v32, %v884_v33 }
 0x766   : > { %v889_v35 = vmul.f32 0.044715, %v885_v34  ;;  %v888_v42 = vmul.f32 0.5, %v885_v34 }
 0x768   : > { %v890_v36 = vmul.f32 %v889_v35, %v885_v34 }
 0x76a   : > { %v891_v37 = vmul.f32 %v890_v36, %v885_v34 }
 0x76b   : > { %v886_v38 = vpop.f32.mrf.mxu1 }
 0x76c   : > { %v892_v39 = vadd.f32 %v891_v37, %v885_v34 }
 0x76e   : > { %v893_v40 = vmul.f32 0.7978846, %v892_v39 }
 0x770   : > { %1214 = vtanh.f32 %v893_v40 }
 0x776   : > { %v1215_v41 = vpop.eup %1214 }
 0x777   : > { %v895_v43 = vadd.f32 1.0, %v1215_v41 }
 0x779   : > { %v896_v44 = vmul.f32 %v895_v43, %v888_v42 }
 0x77b   : > { %v897_v45 = vpack.c.bf16 %v896_v44, %v896_v44 }
 0x77d   : > { %957 = vmatmul.bf16.vlgmr.msrb.gmra.mxu3 %v897_v45 }
 0x800   : > { %v958_v47 = vpop.f32.mrf.mxu3 }
 0x801   : > { %v959_v48 = vadd.f32 %v1191_v46, %v958_v47 }
 0x803   : > { %v962_v49 = vadd.f32 %v959_v48, %v1493_v62 }
 0x805   : > { %963 = vst.msk [vmem:[%s431_s21] sm:$0xff] %vm474_vm0, %v962_v49 }
 0x806   : > { %1243 = shalt.err (!%p1240_p3)
}
 0x807   : > { %1130 = dma.vmem_to_hbm [thread:$0]  (%p1403_p5), %s978_s22, 128, %s980_s2, %s965_s29  }
 0x808   : > { %v960_v50 = vpop.f32.mrf.mxu3 }
 0x809 PF: > { %p1136_p4 = scmp.ge.s32.totalorder %s1278_s28, 2  ;;  %s991_s0 = sand.u32 1, %s1266_s25  }
 0x80a   : > { %s992_s20 = scalar_lea.sflag [#allocation4], %s991_s0 }
 0x80b   : > { %p1133_p7 = pnand %p1136_p4, %p1407_p6 }
 0x80d   : > { %p1134_p8 = pneg %p1133_p7 }
 0x80f   : > { %1261 = dma.done.wait (%p1134_p8), %s992_s20, 128  }
 0x810   : > { %1263 = vsyncadd (%p1134_p8), %s992_s20, 4294967168  ;;  %p23_p9 = scmp.ge.s32.totalorder %s1390_s14, 4   ;;  %s1602_s25 = smov %s1270_s26 }
 0x811   : > { %s1603_s26 = smov %s1274_s27  ;;  %s1604_s27 = smov %s1401_s17 }
 0x812   : > { %s1605_s28 = smov %s1390_s14  ;;  %25 = sbr.rel (!%p23_p9) target bundleno = 8 (0x8), region = 107 }
 0x817   :  { %998 = vsyncpa [#allocation4], 1 }
 0x818   :  { %1000 = vsyncpa [#allocation4 + $0x1], 1 }

</bundles_post_ra>
